<compile_context>
chip_gen: v6e
topology: v6e:2x2x1
jax: 0.10.0
libtpu: 0.0.40
codegen_flags: <defaults>
</compile_context>

<pallas_src>
import math

import numpy as np
import jax
import jax.numpy as jnp
from jax import lax
from jax.experimental import pallas as pl
from jax.experimental.pallas import tpu as pltpu

# ---- small, module-consistent config (scaled-down SmolLM2) ----
BATCH = 2
SEQ = 8
HIDDEN = 64
NUM_HEADS = 4
NUM_KV_HEADS = 2
HEAD_DIM = HIDDEN // NUM_HEADS          # 16
GROUP = NUM_HEADS // NUM_KV_HEADS       # repeat_interleave factor (2)
KV_DIM = NUM_KV_HEADS * HEAD_DIM        # 32
QKV_DIM = HIDDEN + 2 * KV_DIM           # 128
ROWS = BATCH * SEQ                      # 16


# ------------------------------------------------------------------ #
# Host-side (one-time) parameter preparation
# ------------------------------------------------------------------ #
def _make_rotate_half_matrix(num_heads, head_dim):
    """Signed block-diagonal permutation P such that (x @ P) == rotate_half(x)
    for x laid out as [head0 dims | head1 dims | ...] along the last axis."""
    half = head_dim // 2
    blk = np.zeros((head_dim, head_dim), np.float32)
    blk[half:, :half] = -np.eye(half, dtype=np.float32)   # out[:half]  = -x[half:]
    blk[:half, half:] = np.eye(half, dtype=np.float32)    # out[half:]  =  x[:half]
    return jnp.asarray(np.kron(np.eye(num_heads, dtype=np.float32), blk))


def prepare_weights(wq, wk, wv, wo):
    """PyTorch-style (out_features, in_features) weights -> fused, pre-transposed."""
    wqkv_t = jnp.concatenate([wq, wk, wv], axis=0).T    # (H, H + 2*nKV*D) = (64, 128)
    wo_t = wo.T                                         # (H, H)
    return wqkv_t, wo_t


def prepare_rope(cos, sin):
    """cos/sin of shape (1, 1, S, D) -> (B*S, nH*D) slabs (tiled over heads & batch)."""
    cos2 = jnp.tile(cos.reshape(SEQ, HEAD_DIM), (BATCH, NUM_HEADS))   # (B*S, 64)
    sin2 = jnp.tile(sin.reshape(SEQ, HEAD_DIM), (BATCH, NUM_HEADS))   # (B*S, 64)
    return cos2, sin2


# ------------------------------------------------------------------ #
# Fused Pallas kernel: one invocation does the whole forward (both batches)
# ------------------------------------------------------------------ #
def _fused_attn_kernel(x_ref, wqkv_ref, wo_ref, cos_ref, sin_ref,
                       rotq_ref, rotk_ref, o_ref):
    # x_ref: (B*S, H); heads packed along lanes throughout.
    x = x_ref[...].astype(jnp.float32)

    # Fused QKV projection: (B*S, H) @ (H, H + 2*KV_DIM) -> (B*S, 128)
    qkv = jnp.dot(x, wqkv_ref[...], preferred_element_type=jnp.float32)
    q = qkv[:, :HIDDEN]                       # (B*S, 64)  4 query heads
    k = qkv[:, HIDDEN:HIDDEN + KV_DIM]        # (B*S, 32)  2 kv heads
    v = qkv[:, HIDDEN + KV_DIM:]              # (B*S, 32)

    cos = cos_ref[...]                        # (B*S, 64) tiled over query heads & batch
    sin = sin_ref[...]
    cos_k = cos[:, :KV_DIM]                   # identical per-head tiles -> reuse prefix
    sin_k = sin[:, :KV_DIM]

    # Rotary: rotate_half via signed-permutation matmul (MXU; no lane shuffles).
    q = q * cos + jnp.dot(q, rotq_ref[...], preferred_element_type=jnp.float32) * sin
    k = k * cos_k + jnp.dot(k, rotk_ref[...], preferred_element_type=jnp.float32) * sin_k

    scale = 1.0 / math.sqrt(HEAD_DIM)
    # contract last dims of q-tile and k-tile directly => q @ k^T without a transpose op
    dn_qkt = (((1,), (1,)), ((), ()))

    # GQA attention, fully unrolled over (batch, query head); K/V for a kv head are
    # computed once and reused by its GROUP of query heads.
    # TODO(synk): attention_mask is None and use_cache=False in this setup; an additive
    # mask would be added to `s` before the softmax and kv_cache is not implemented.
    batch_slabs = []
    for b in range(BATCH):
        r0 = b * SEQ
        head_outs = []
        for h in range(NUM_HEADS):
            kvh = h // GROUP
            qh = q[r0:r0 + SEQ, h * HEAD_DIM:(h + 1) * HEAD_DIM]          # (S, D)
            kh = k[r0:r0 + SEQ, kvh * HEAD_DIM:(kvh + 1) * HEAD_DIM]      # (S, D)
            vh = v[r0:r0 + SEQ, kvh * HEAD_DIM:(kvh + 1) * HEAD_DIM]      # (S, D)

            s = lax.dot_general(qh, kh, dn_qkt,
                                preferred_element_type=jnp.float32) * scale   # (S, S)
            s = s - jnp.max(s, axis=-1, keepdims=True)
            p = jnp.exp(s)
            p = p / jnp.sum(p, axis=-1, keepdims=True)
            head_outs.append(jnp.dot(p, vh, preferred_element_type=jnp.float32))  # (S, D)

        batch_slabs.append(jnp.concatenate(head_outs, axis=-1))          # (S, H)

    attn = jnp.concatenate(batch_slabs, axis=0)                          # (B*S, H)

    # Output projection, written as one (B*S, H) slab.
    o_ref[...] = jnp.dot(attn, wo_ref[...],
                         preferred_element_type=jnp.float32).astype(o_ref.dtype)


@jax.jit
def smollm2_attention_forward(hidden_states, cos_t, sin_t, wqkv_t, wo_t, rot_q, rot_k):
    B, S, H = hidden_states.shape
    x2d = hidden_states.reshape(B * S, H)

    out = pl.pallas_call(
        _fused_attn_kernel,
        out_shape=jax.ShapeDtypeStruct((B * S, H), hidden_states.dtype),
        grid=(1,),
        in_specs=[
            pl.BlockSpec((B * S, H), lambda i: (0, 0)),                 # hidden states
            pl.BlockSpec(wqkv_t.shape, lambda i: (0, 0)),               # fused QKV weight
            pl.BlockSpec(wo_t.shape, lambda i: (0, 0)),                 # output weight
            pl.BlockSpec((B * S, H), lambda i: (0, 0)),                 # cos (batch+head tiled)
            pl.BlockSpec((B * S, H), lambda i: (0, 0)),                 # sin (batch+head tiled)
            pl.BlockSpec(rot_q.shape, lambda i: (0, 0)),                # rotate_half matrix (q)
            pl.BlockSpec(rot_k.shape, lambda i: (0, 0)),                # rotate_half matrix (k)
        ],
        out_specs=pl.BlockSpec((B * S, H), lambda i: (0, 0)),
        compiler_params=pltpu.CompilerParams(
            dimension_semantics=("arbitrary",)),
    )(x2d, wqkv_t, wo_t, cos_t, sin_t, rot_q, rot_k)

    return out.reshape(B, S, H)


# ------------------------------------------------------------------ #
# Pure-JAX reference (for correctness verification)
# ------------------------------------------------------------------ #
def _reference(hidden_states, cos, sin, wq, wk, wv, wo):
    B, S, H = hidden_states.shape
    q = hidden_states @ wq.T
    k = hidden_states @ wk.T
    v = hidden_states @ wv.T
    q = q.reshape(B, S, NUM_HEADS, HEAD_DIM).transpose(0, 2, 1, 3)
    k = k.reshape(B, S, NUM_KV_HEADS, HEAD_DIM).transpose(0, 2, 1, 3)
    v = v.reshape(B, S, NUM_KV_HEADS, HEAD_DIM).transpose(0, 2, 1, 3)

    def rot_half(x):
        x1, x2 = jnp.split(x, 2, axis=-1)
        return jnp.concatenate([-x2, x1], axis=-1)

    q = q * cos + rot_half(q) * sin
    k = k * cos + rot_half(k) * sin
    k = jnp.repeat(k, GROUP, axis=1)
    v = jnp.repeat(v, GROUP, axis=1)
    scores = jnp.einsum("bhqd,bhkd->bhqk", q, k) / math.sqrt(HEAD_DIM)
    p = jax.nn.softmax(scores, axis=-1)
    out = jnp.einsum("bhqk,bhkd->bhqd", p, v)
    out = out.transpose(0, 2, 1, 3).reshape(B, S, H)
    return out @ wo.T


# ------------------------------------------------------------------ #
if __name__ == "__main__":
    key = jax.random.PRNGKey(0)
    k_x, k_q, k_k, k_v, k_o = jax.random.split(key, 5)

    hidden_states = jax.random.normal(k_x, (BATCH, SEQ, HIDDEN), jnp.float32)

    def init_linear(k, out_f, in_f):
        bound = 1.0 / math.sqrt(in_f)
        return jax.random.uniform(k, (out_f, in_f), jnp.float32, -bound, bound)

    wq = init_linear(k_q, HIDDEN, HIDDEN)
    wk = init_linear(k_k, NUM_KV_HEADS * HEAD_DIM, HIDDEN)
    wv = init_linear(k_v, NUM_KV_HEADS * HEAD_DIM, HIDDEN)
    wo = init_linear(k_o, HIDDEN, HIDDEN)

    # rotary embeddings: cos/sin of shape (1, 1, S, D), as the module expects
    inv_freq = 1.0 / (10000.0 ** (jnp.arange(0, HEAD_DIM, 2, dtype=jnp.float32) / HEAD_DIM))
    pos = jnp.arange(SEQ, dtype=jnp.float32)
    freqs = jnp.outer(pos, inv_freq)                      # (S, D/2)
    emb = jnp.concatenate([freqs, freqs], axis=-1)        # (S, D)
    cos = jnp.cos(emb)[None, None]
    sin = jnp.sin(emb)[None, None]

    # one-time parameter preparation (outside the jitted forward)
    wqkv_t, wo_t = prepare_weights(wq, wk, wv, wo)
    cos_t, sin_t = prepare_rope(cos, sin)
    rot_q = _make_rotate_half_matrix(NUM_HEADS, HEAD_DIM)        # (64, 64)
    rot_k = _make_rotate_half_matrix(NUM_KV_HEADS, HEAD_DIM)     # (32, 32)

    out = smollm2_attention_forward(hidden_states, cos_t, sin_t, wqkv_t, wo_t,
                                    rot_q, rot_k)
    out = jax.block_until_ready(out)

    ref = _reference(hidden_states, cos, sin, wq, wk, wv, wo)
    assert out.shape == (BATCH, SEQ, HIDDEN)
    assert jnp.allclose(out, ref, atol=1e-4, rtol=1e-4)

    print("KERNEL_OK")
</pallas_src>

<mosaic_0001>
module attributes {stable_mosaic.version = 11 : i64} {
  func.func @_fused_attn_kernel(%arg0: i32, %arg1: memref<16x64xf32, #tpu.memory_space<vmem>>, %arg2: memref<64x128xf32, #tpu.memory_space<vmem>>, %arg3: memref<64x64xf32, #tpu.memory_space<vmem>>, %arg4: memref<16x64xf32, #tpu.memory_space<vmem>>, %arg5: memref<16x64xf32, #tpu.memory_space<vmem>>, %arg6: memref<64x64xf32, #tpu.memory_space<vmem>>, %arg7: memref<32x32xf32, #tpu.memory_space<vmem>>, %arg8: memref<16x64xf32, #tpu.memory_space<vmem>>) attributes {dimension_semantics = [#tpu.dimension_semantics<arbitrary>], iteration_bounds = array<i64: 1>, scalar_prefetch = 0 : i64, scratch_operands = 0 : i64, tpu.core_type = #tpu.core_type<tc>, window_params = [{pipeline_mode = #tpu.pipeline_mode<synchronous>, transform_indices = @transform_0, window_bounds = array<i64: 16, 64>}, {pipeline_mode = #tpu.pipeline_mode<synchronous>, transform_indices = @transform_1, window_bounds = array<i64: 64, 128>}, {pipeline_mode = #tpu.pipeline_mode<synchronous>, transform_indices = @transform_2, window_bounds = array<i64: 64, 64>}, {pipeline_mode = #tpu.pipeline_mode<synchronous>, transform_indices = @transform_3, window_bounds = array<i64: 16, 64>}, {pipeline_mode = #tpu.pipeline_mode<synchronous>, transform_indices = @transform_4, window_bounds = array<i64: 16, 64>}, {pipeline_mode = #tpu.pipeline_mode<synchronous>, transform_indices = @transform_5, window_bounds = array<i64: 64, 64>}, {pipeline_mode = #tpu.pipeline_mode<synchronous>, transform_indices = @transform_6, window_bounds = array<i64: 32, 32>}, {pipeline_mode = #tpu.pipeline_mode<synchronous>, transform_indices = @transform_7, window_bounds = array<i64: 16, 64>}]} {
    %c0 = arith.constant 0 : index
    %c0_0 = arith.constant 0 : index
    %0 = vector.load %arg1[%c0, %c0_0] : memref<16x64xf32, #tpu.memory_space<vmem>>, vector<16x64xf32>
    %c0_1 = arith.constant 0 : index
    %c0_2 = arith.constant 0 : index
    %1 = vector.load %arg2[%c0_1, %c0_2] : memref<64x128xf32, #tpu.memory_space<vmem>>, vector<64x128xf32>
    %cst = arith.constant dense<0.000000e+00> : vector<16x128xf32>
    %2 = tpu.matmul %0, %1, %cst {dimension_numbers = #tpu.dot_dimension_numbers<[1], [0], [0], [1], [0, 0, 1, 1], [], []>} : vector<16x64xf32>, vector<64x128xf32>, vector<16x128xf32> -> vector<16x128xf32>
    %3 = vector.extract_strided_slice %2 {offsets = [0, 0], sizes = [16, 64], strides = [1, 1]} : vector<16x128xf32> to vector<16x64xf32>
    %4 = vector.extract_strided_slice %2 {offsets = [0, 64], sizes = [16, 32], strides = [1, 1]} : vector<16x128xf32> to vector<16x32xf32>
    %5 = vector.extract_strided_slice %2 {offsets = [0, 96], sizes = [16, 32], strides = [1, 1]} : vector<16x128xf32> to vector<16x32xf32>
    %c0_3 = arith.constant 0 : index
    %c0_4 = arith.constant 0 : index
    %6 = vector.load %arg4[%c0_3, %c0_4] : memref<16x64xf32, #tpu.memory_space<vmem>>, vector<16x64xf32>
    %c0_5 = arith.constant 0 : index
    %c0_6 = arith.constant 0 : index
    %7 = vector.load %arg5[%c0_5, %c0_6] : memref<16x64xf32, #tpu.memory_space<vmem>>, vector<16x64xf32>
    %8 = vector.extract_strided_slice %6 {offsets = [0, 0], sizes = [16, 32], strides = [1, 1]} : vector<16x64xf32> to vector<16x32xf32>
    %9 = vector.extract_strided_slice %7 {offsets = [0, 0], sizes = [16, 32], strides = [1, 1]} : vector<16x64xf32> to vector<16x32xf32>
    %10 = arith.mulf %3, %6 : vector<16x64xf32>
    %c0_7 = arith.constant 0 : index
    %c0_8 = arith.constant 0 : index
    %11 = vector.load %arg6[%c0_7, %c0_8] : memref<64x64xf32, #tpu.memory_space<vmem>>, vector<64x64xf32>
    %cst_9 = arith.constant dense<0.000000e+00> : vector<16x64xf32>
    %12 = tpu.matmul %3, %11, %cst_9 {dimension_numbers = #tpu.dot_dimension_numbers<[1], [0], [0], [1], [0, 0, 1, 1], [], []>} : vector<16x64xf32>, vector<64x64xf32>, vector<16x64xf32> -> vector<16x64xf32>
    %13 = arith.mulf %12, %7 : vector<16x64xf32>
    %14 = arith.addf %10, %13 : vector<16x64xf32>
    %15 = arith.mulf %4, %8 : vector<16x32xf32>
    %c0_10 = arith.constant 0 : index
    %c0_11 = arith.constant 0 : index
    %16 = vector.load %arg7[%c0_10, %c0_11] : memref<32x32xf32, #tpu.memory_space<vmem>>, vector<32x32xf32>
    %cst_12 = arith.constant dense<0.000000e+00> : vector<16x32xf32>
    %17 = tpu.matmul %4, %16, %cst_12 {dimension_numbers = #tpu.dot_dimension_numbers<[1], [0], [0], [1], [0, 0, 1, 1], [], []>} : vector<16x32xf32>, vector<32x32xf32>, vector<16x32xf32> -> vector<16x32xf32>
    %18 = arith.mulf %17, %9 : vector<16x32xf32>
    %19 = arith.addf %15, %18 : vector<16x32xf32>
    %20 = vector.extract_strided_slice %14 {offsets = [0, 0], sizes = [8, 16], strides = [1, 1]} : vector<16x64xf32> to vector<8x16xf32>
    %21 = vector.extract_strided_slice %19 {offsets = [0, 0], sizes = [8, 16], strides = [1, 1]} : vector<16x32xf32> to vector<8x16xf32>
    %22 = vector.extract_strided_slice %5 {offsets = [0, 0], sizes = [8, 16], strides = [1, 1]} : vector<16x32xf32> to vector<8x16xf32>
    %cst_13 = arith.constant dense<0.000000e+00> : vector<8x8xf32>
    %23 = tpu.matmul %20, %21, %cst_13 {dimension_numbers = #tpu.dot_dimension_numbers<[1], [1], [0], [0], [0, 0, 1, 0], [], []>} : vector<8x16xf32>, vector<8x16xf32>, vector<8x8xf32> -> vector<8x8xf32>
    %cst_14 = arith.constant 2.500000e-01 : f32
    %24 = vector.broadcast %cst_14 : f32 to vector<8x8xf32>
    %25 = arith.mulf %23, %24 : vector<8x8xf32>
    %cst_15 = arith.constant dense<0xFF800000> : vector<8xf32>
    %26 = vector.multi_reduction <maximumf>, %25, %cst_15 [1] : vector<8x8xf32> to vector<8xf32>
    %27 = vector.shape_cast %26 : vector<8xf32> to vector<8x1xf32>
    %28 = vector.broadcast %27 : vector<8x1xf32> to vector<8x8xf32>
    %29 = arith.subf %25, %28 : vector<8x8xf32>
    %30 = math.exp %29 : vector<8x8xf32>
    %cst_16 = arith.constant dense<0.000000e+00> : vector<8xf32>
    %31 = vector.multi_reduction <add>, %30, %cst_16 [1] : vector<8x8xf32> to vector<8xf32>
    %32 = vector.shape_cast %31 : vector<8xf32> to vector<8x1xf32>
    %33 = vector.broadcast %32 : vector<8x1xf32> to vector<8x8xf32>
    %34 = arith.divf %30, %33 : vector<8x8xf32>
    %cst_17 = arith.constant dense<0.000000e+00> : vector<8x16xf32>
    %35 = tpu.matmul %34, %22, %cst_17 {dimension_numbers = #tpu.dot_dimension_numbers<[1], [0], [0], [1], [0, 0, 1, 1], [], []>} : vector<8x8xf32>, vector<8x16xf32>, vector<8x16xf32> -> vector<8x16xf32>
    %36 = vector.extract_strided_slice %14 {offsets = [0, 16], sizes = [8, 16], strides = [1, 1]} : vector<16x64xf32> to vector<8x16xf32>
    %37 = vector.extract_strided_slice %19 {offsets = [0, 0], sizes = [8, 16], strides = [1, 1]} : vector<16x32xf32> to vector<8x16xf32>
    %38 = vector.extract_strided_slice %5 {offsets = [0, 0], sizes = [8, 16], strides = [1, 1]} : vector<16x32xf32> to vector<8x16xf32>
    %cst_18 = arith.constant dense<0.000000e+00> : vector<8x8xf32>
    %39 = tpu.matmul %36, %37, %cst_18 {dimension_numbers = #tpu.dot_dimension_numbers<[1], [1], [0], [0], [0, 0, 1, 0], [], []>} : vector<8x16xf32>, vector<8x16xf32>, vector<8x8xf32> -> vector<8x8xf32>
    %cst_19 = arith.constant 2.500000e-01 : f32
    %40 = vector.broadcast %cst_19 : f32 to vector<8x8xf32>
    %41 = arith.mulf %39, %40 : vector<8x8xf32>
    %cst_20 = arith.constant dense<0xFF800000> : vector<8xf32>
    %42 = vector.multi_reduction <maximumf>, %41, %cst_20 [1] : vector<8x8xf32> to vector<8xf32>
    %43 = vector.shape_cast %42 : vector<8xf32> to vector<8x1xf32>
    %44 = vector.broadcast %43 : vector<8x1xf32> to vector<8x8xf32>
    %45 = arith.subf %41, %44 : vector<8x8xf32>
    %46 = math.exp %45 : vector<8x8xf32>
    %cst_21 = arith.constant dense<0.000000e+00> : vector<8xf32>
    %47 = vector.multi_reduction <add>, %46, %cst_21 [1] : vector<8x8xf32> to vector<8xf32>
    %48 = vector.shape_cast %47 : vector<8xf32> to vector<8x1xf32>
    %49 = vector.broadcast %48 : vector<8x1xf32> to vector<8x8xf32>
    %50 = arith.divf %46, %49 : vector<8x8xf32>
    %cst_22 = arith.constant dense<0.000000e+00> : vector<8x16xf32>
    %51 = tpu.matmul %50, %38, %cst_22 {dimension_numbers = #tpu.dot_dimension_numbers<[1], [0], [0], [1], [0, 0, 1, 1], [], []>} : vector<8x8xf32>, vector<8x16xf32>, vector<8x16xf32> -> vector<8x16xf32>
    %52 = vector.extract_strided_slice %14 {offsets = [0, 32], sizes = [8, 16], strides = [1, 1]} : vector<16x64xf32> to vector<8x16xf32>
    %53 = vector.extract_strided_slice %19 {offsets = [0, 16], sizes = [8, 16], strides = [1, 1]} : vector<16x32xf32> to vector<8x16xf32>
    %54 = vector.extract_strided_slice %5 {offsets = [0, 16], sizes = [8, 16], strides = [1, 1]} : vector<16x32xf32> to vector<8x16xf32>
    %cst_23 = arith.constant dense<0.000000e+00> : vector<8x8xf32>
    %55 = tpu.matmul %52, %53, %cst_23 {dimension_numbers = #tpu.dot_dimension_numbers<[1], [1], [0], [0], [0, 0, 1, 0], [], []>} : vector<8x16xf32>, vector<8x16xf32>, vector<8x8xf32> -> vector<8x8xf32>
    %cst_24 = arith.constant 2.500000e-01 : f32
    %56 = vector.broadcast %cst_24 : f32 to vector<8x8xf32>
    %57 = arith.mulf %55, %56 : vector<8x8xf32>
    %cst_25 = arith.constant dense<0xFF800000> : vector<8xf32>
    %58 = vector.multi_reduction <maximumf>, %57, %cst_25 [1] : vector<8x8xf32> to vector<8xf32>
    %59 = vector.shape_cast %58 : vector<8xf32> to vector<8x1xf32>
    %60 = vector.broadcast %59 : vector<8x1xf32> to vector<8x8xf32>
    %61 = arith.subf %57, %60 : vector<8x8xf32>
    %62 = math.exp %61 : vector<8x8xf32>
    %cst_26 = arith.constant dense<0.000000e+00> : vector<8xf32>
    %63 = vector.multi_reduction <add>, %62, %cst_26 [1] : vector<8x8xf32> to vector<8xf32>
    %64 = vector.shape_cast %63 : vector<8xf32> to vector<8x1xf32>
    %65 = vector.broadcast %64 : vector<8x1xf32> to vector<8x8xf32>
    %66 = arith.divf %62, %65 : vector<8x8xf32>
    %cst_27 = arith.constant dense<0.000000e+00> : vector<8x16xf32>
    %67 = tpu.matmul %66, %54, %cst_27 {dimension_numbers = #tpu.dot_dimension_numbers<[1], [0], [0], [1], [0, 0, 1, 1], [], []>} : vector<8x8xf32>, vector<8x16xf32>, vector<8x16xf32> -> vector<8x16xf32>
    %68 = vector.extract_strided_slice %14 {offsets = [0, 48], sizes = [8, 16], strides = [1, 1]} : vector<16x64xf32> to vector<8x16xf32>
    %69 = vector.extract_strided_slice %19 {offsets = [0, 16], sizes = [8, 16], strides = [1, 1]} : vector<16x32xf32> to vector<8x16xf32>
    %70 = vector.extract_strided_slice %5 {offsets = [0, 16], sizes = [8, 16], strides = [1, 1]} : vector<16x32xf32> to vector<8x16xf32>
    %cst_28 = arith.constant dense<0.000000e+00> : vector<8x8xf32>
    %71 = tpu.matmul %68, %69, %cst_28 {dimension_numbers = #tpu.dot_dimension_numbers<[1], [1], [0], [0], [0, 0, 1, 0], [], []>} : vector<8x16xf32>, vector<8x16xf32>, vector<8x8xf32> -> vector<8x8xf32>
    %cst_29 = arith.constant 2.500000e-01 : f32
    %72 = vector.broadcast %cst_29 : f32 to vector<8x8xf32>
    %73 = arith.mulf %71, %72 : vector<8x8xf32>
    %cst_30 = arith.constant dense<0xFF800000> : vector<8xf32>
    %74 = vector.multi_reduction <maximumf>, %73, %cst_30 [1] : vector<8x8xf32> to vector<8xf32>
    %75 = vector.shape_cast %74 : vector<8xf32> to vector<8x1xf32>
    %76 = vector.broadcast %75 : vector<8x1xf32> to vector<8x8xf32>
    %77 = arith.subf %73, %76 : vector<8x8xf32>
    %78 = math.exp %77 : vector<8x8xf32>
    %cst_31 = arith.constant dense<0.000000e+00> : vector<8xf32>
    %79 = vector.multi_reduction <add>, %78, %cst_31 [1] : vector<8x8xf32> to vector<8xf32>
    %80 = vector.shape_cast %79 : vector<8xf32> to vector<8x1xf32>
    %81 = vector.broadcast %80 : vector<8x1xf32> to vector<8x8xf32>
    %82 = arith.divf %78, %81 : vector<8x8xf32>
    %cst_32 = arith.constant dense<0.000000e+00> : vector<8x16xf32>
    %83 = tpu.matmul %82, %70, %cst_32 {dimension_numbers = #tpu.dot_dimension_numbers<[1], [0], [0], [1], [0, 0, 1, 1], [], []>} : vector<8x8xf32>, vector<8x16xf32>, vector<8x16xf32> -> vector<8x16xf32>
    %84 = tpu.concatenate %35, %51, %67, %83 in 1 : vector<8x16xf32>, vector<8x16xf32>, vector<8x16xf32>, vector<8x16xf32> -> vector<8x64xf32>
    %85 = vector.extract_strided_slice %14 {offsets = [8, 0], sizes = [8, 16], strides = [1, 1]} : vector<16x64xf32> to vector<8x16xf32>
    %86 = vector.extract_strided_slice %19 {offsets = [8, 0], sizes = [8, 16], strides = [1, 1]} : vector<16x32xf32> to vector<8x16xf32>
    %87 = vector.extract_strided_slice %5 {offsets = [8, 0], sizes = [8, 16], strides = [1, 1]} : vector<16x32xf32> to vector<8x16xf32>
    %cst_33 = arith.constant dense<0.000000e+00> : vector<8x8xf32>
    %88 = tpu.matmul %85, %86, %cst_33 {dimension_numbers = #tpu.dot_dimension_numbers<[1], [1], [0], [0], [0, 0, 1, 0], [], []>} : vector<8x16xf32>, vector<8x16xf32>, vector<8x8xf32> -> vector<8x8xf32>
    %cst_34 = arith.constant 2.500000e-01 : f32
    %89 = vector.broadcast %cst_34 : f32 to vector<8x8xf32>
    %90 = arith.mulf %88, %89 : vector<8x8xf32>
    %cst_35 = arith.constant dense<0xFF800000> : vector<8xf32>
    %91 = vector.multi_reduction <maximumf>, %90, %cst_35 [1] : vector<8x8xf32> to vector<8xf32>
    %92 = vector.shape_cast %91 : vector<8xf32> to vector<8x1xf32>
    %93 = vector.broadcast %92 : vector<8x1xf32> to vector<8x8xf32>
    %94 = arith.subf %90, %93 : vector<8x8xf32>
    %95 = math.exp %94 : vector<8x8xf32>
    %cst_36 = arith.constant dense<0.000000e+00> : vector<8xf32>
    %96 = vector.multi_reduction <add>, %95, %cst_36 [1] : vector<8x8xf32> to vector<8xf32>
    %97 = vector.shape_cast %96 : vector<8xf32> to vector<8x1xf32>
    %98 = vector.broadcast %97 : vector<8x1xf32> to vector<8x8xf32>
    %99 = arith.divf %95, %98 : vector<8x8xf32>
    %cst_37 = arith.constant dense<0.000000e+00> : vector<8x16xf32>
    %100 = tpu.matmul %99, %87, %cst_37 {dimension_numbers = #tpu.dot_dimension_numbers<[1], [0], [0], [1], [0, 0, 1, 1], [], []>} : vector<8x8xf32>, vector<8x16xf32>, vector<8x16xf32> -> vector<8x16xf32>
    %101 = vector.extract_strided_slice %14 {offsets = [8, 16], sizes = [8, 16], strides = [1, 1]} : vector<16x64xf32> to vector<8x16xf32>
    %102 = vector.extract_strided_slice %19 {offsets = [8, 0], sizes = [8, 16], strides = [1, 1]} : vector<16x32xf32> to vector<8x16xf32>
    %103 = vector.extract_strided_slice %5 {offsets = [8, 0], sizes = [8, 16], strides = [1, 1]} : vector<16x32xf32> to vector<8x16xf32>
    %cst_38 = arith.constant dense<0.000000e+00> : vector<8x8xf32>
    %104 = tpu.matmul %101, %102, %cst_38 {dimension_numbers = #tpu.dot_dimension_numbers<[1], [1], [0], [0], [0, 0, 1, 0], [], []>} : vector<8x16xf32>, vector<8x16xf32>, vector<8x8xf32> -> vector<8x8xf32>
    %cst_39 = arith.constant 2.500000e-01 : f32
    %105 = vector.broadcast %cst_39 : f32 to vector<8x8xf32>
    %106 = arith.mulf %104, %105 : vector<8x8xf32>
    %cst_40 = arith.constant dense<0xFF800000> : vector<8xf32>
    %107 = vector.multi_reduction <maximumf>, %106, %cst_40 [1] : vector<8x8xf32> to vector<8xf32>
    %108 = vector.shape_cast %107 : vector<8xf32> to vector<8x1xf32>
    %109 = vector.broadcast %108 : vector<8x1xf32> to vector<8x8xf32>
    %110 = arith.subf %106, %109 : vector<8x8xf32>
    %111 = math.exp %110 : vector<8x8xf32>
    %cst_41 = arith.constant dense<0.000000e+00> : vector<8xf32>
    %112 = vector.multi_reduction <add>, %111, %cst_41 [1] : vector<8x8xf32> to vector<8xf32>
    %113 = vector.shape_cast %112 : vector<8xf32> to vector<8x1xf32>
    %114 = vector.broadcast %113 : vector<8x1xf32> to vector<8x8xf32>
    %115 = arith.divf %111, %114 : vector<8x8xf32>
    %cst_42 = arith.constant dense<0.000000e+00> : vector<8x16xf32>
    %116 = tpu.matmul %115, %103, %cst_42 {dimension_numbers = #tpu.dot_dimension_numbers<[1], [0], [0], [1], [0, 0, 1, 1], [], []>} : vector<8x8xf32>, vector<8x16xf32>, vector<8x16xf32> -> vector<8x16xf32>
    %117 = vector.extract_strided_slice %14 {offsets = [8, 32], sizes = [8, 16], strides = [1, 1]} : vector<16x64xf32> to vector<8x16xf32>
    %118 = vector.extract_strided_slice %19 {offsets = [8, 16], sizes = [8, 16], strides = [1, 1]} : vector<16x32xf32> to vector<8x16xf32>
    %119 = vector.extract_strided_slice %5 {offsets = [8, 16], sizes = [8, 16], strides = [1, 1]} : vector<16x32xf32> to vector<8x16xf32>
    %cst_43 = arith.constant dense<0.000000e+00> : vector<8x8xf32>
    %120 = tpu.matmul %117, %118, %cst_43 {dimension_numbers = #tpu.dot_dimension_numbers<[1], [1], [0], [0], [0, 0, 1, 0], [], []>} : vector<8x16xf32>, vector<8x16xf32>, vector<8x8xf32> -> vector<8x8xf32>
    %cst_44 = arith.constant 2.500000e-01 : f32
    %121 = vector.broadcast %cst_44 : f32 to vector<8x8xf32>
    %122 = arith.mulf %120, %121 : vector<8x8xf32>
    %cst_45 = arith.constant dense<0xFF800000> : vector<8xf32>
    %123 = vector.multi_reduction <maximumf>, %122, %cst_45 [1] : vector<8x8xf32> to vector<8xf32>
    %124 = vector.shape_cast %123 : vector<8xf32> to vector<8x1xf32>
    %125 = vector.broadcast %124 : vector<8x1xf32> to vector<8x8xf32>
    %126 = arith.subf %122, %125 : vector<8x8xf32>
    %127 = math.exp %126 : vector<8x8xf32>
    %cst_46 = arith.constant dense<0.000000e+00> : vector<8xf32>
    %128 = vector.multi_reduction <add>, %127, %cst_46 [1] : vector<8x8xf32> to vector<8xf32>
    %129 = vector.shape_cast %128 : vector<8xf32> to vector<8x1xf32>
    %130 = vector.broadcast %129 : vector<8x1xf32> to vector<8x8xf32>
    %131 = arith.divf %127, %130 : vector<8x8xf32>
    %cst_47 = arith.constant dense<0.000000e+00> : vector<8x16xf32>
    %132 = tpu.matmul %131, %119, %cst_47 {dimension_numbers = #tpu.dot_dimension_numbers<[1], [0], [0], [1], [0, 0, 1, 1], [], []>} : vector<8x8xf32>, vector<8x16xf32>, vector<8x16xf32> -> vector<8x16xf32>
    %133 = vector.extract_strided_slice %14 {offsets = [8, 48], sizes = [8, 16], strides = [1, 1]} : vector<16x64xf32> to vector<8x16xf32>
    %134 = vector.extract_strided_slice %19 {offsets = [8, 16], sizes = [8, 16], strides = [1, 1]} : vector<16x32xf32> to vector<8x16xf32>
    %135 = vector.extract_strided_slice %5 {offsets = [8, 16], sizes = [8, 16], strides = [1, 1]} : vector<16x32xf32> to vector<8x16xf32>
    %cst_48 = arith.constant dense<0.000000e+00> : vector<8x8xf32>
    %136 = tpu.matmul %133, %134, %cst_48 {dimension_numbers = #tpu.dot_dimension_numbers<[1], [1], [0], [0], [0, 0, 1, 0], [], []>} : vector<8x16xf32>, vector<8x16xf32>, vector<8x8xf32> -> vector<8x8xf32>
    %cst_49 = arith.constant 2.500000e-01 : f32
    %137 = vector.broadcast %cst_49 : f32 to vector<8x8xf32>
    %138 = arith.mulf %136, %137 : vector<8x8xf32>
    %cst_50 = arith.constant dense<0xFF800000> : vector<8xf32>
    %139 = vector.multi_reduction <maximumf>, %138, %cst_50 [1] : vector<8x8xf32> to vector<8xf32>
    %140 = vector.shape_cast %139 : vector<8xf32> to vector<8x1xf32>
    %141 = vector.broadcast %140 : vector<8x1xf32> to vector<8x8xf32>
    %142 = arith.subf %138, %141 : vector<8x8xf32>
    %143 = math.exp %142 : vector<8x8xf32>
    %cst_51 = arith.constant dense<0.000000e+00> : vector<8xf32>
    %144 = vector.multi_reduction <add>, %143, %cst_51 [1] : vector<8x8xf32> to vector<8xf32>
    %145 = vector.shape_cast %144 : vector<8xf32> to vector<8x1xf32>
    %146 = vector.broadcast %145 : vector<8x1xf32> to vector<8x8xf32>
    %147 = arith.divf %143, %146 : vector<8x8xf32>
    %cst_52 = arith.constant dense<0.000000e+00> : vector<8x16xf32>
    %148 = tpu.matmul %147, %135, %cst_52 {dimension_numbers = #tpu.dot_dimension_numbers<[1], [0], [0], [1], [0, 0, 1, 1], [], []>} : vector<8x8xf32>, vector<8x16xf32>, vector<8x16xf32> -> vector<8x16xf32>
    %149 = tpu.concatenate %100, %116, %132, %148 in 1 : vector<8x16xf32>, vector<8x16xf32>, vector<8x16xf32>, vector<8x16xf32> -> vector<8x64xf32>
    %150 = tpu.concatenate %84, %149 in 0 : vector<8x64xf32>, vector<8x64xf32> -> vector<16x64xf32>
    %c0_53 = arith.constant 0 : index
    %c0_54 = arith.constant 0 : index
    %151 = vector.load %arg3[%c0_53, %c0_54] : memref<64x64xf32, #tpu.memory_space<vmem>>, vector<64x64xf32>
    %cst_55 = arith.constant dense<0.000000e+00> : vector<16x64xf32>
    %152 = tpu.matmul %150, %151, %cst_55 {dimension_numbers = #tpu.dot_dimension_numbers<[1], [0], [0], [1], [0, 0, 1, 1], [], []>} : vector<16x64xf32>, vector<64x64xf32>, vector<16x64xf32> -> vector<16x64xf32>
    %c0_56 = arith.constant 0 : index
    %c0_57 = arith.constant 0 : index
    %153 = vector.load %arg8[%c0_56, %c0_57] : memref<16x64xf32, #tpu.memory_space<vmem>>, vector<16x64xf32>
    tpu.vector_store %arg8[%c0_56, %c0_57], %152 {strides = array<i32>} : memref<16x64xf32, #tpu.memory_space<vmem>>, vector<16x64xf32>,
    return
  }
  func.func @transform_0(%arg0: i32) -> (i32, i32) {
    %c0_i32 = arith.constant 0 : i32
    %c0_i32_0 = arith.constant 0 : i32
    %c0_i32_1 = arith.constant 0 : i32
    return %c0_i32, %c0_i32_0 : i32, i32
  }
  func.func @transform_1(%arg0: i32) -> (i32, i32) {
    %c0_i32 = arith.constant 0 : i32
    %c0_i32_0 = arith.constant 0 : i32
    %c0_i32_1 = arith.constant 0 : i32
    return %c0_i32, %c0_i32_0 : i32, i32
  }
  func.func @transform_2(%arg0: i32) -> (i32, i32) {
    %c0_i32 = arith.constant 0 : i32
    %c0_i32_0 = arith.constant 0 : i32
    %c0_i32_1 = arith.constant 0 : i32
    return %c0_i32, %c0_i32_0 : i32, i32
  }
  func.func @transform_3(%arg0: i32) -> (i32, i32) {
    %c0_i32 = arith.constant 0 : i32
    %c0_i32_0 = arith.constant 0 : i32
    %c0_i32_1 = arith.constant 0 : i32
    return %c0_i32, %c0_i32_0 : i32, i32
  }
  func.func @transform_4(%arg0: i32) -> (i32, i32) {
    %c0_i32 = arith.constant 0 : i32
    %c0_i32_0 = arith.constant 0 : i32
    %c0_i32_1 = arith.constant 0 : i32
    return %c0_i32, %c0_i32_0 : i32, i32
  }
  func.func @transform_5(%arg0: i32) -> (i32, i32) {
    %c0_i32 = arith.constant 0 : i32
    %c0_i32_0 = arith.constant 0 : i32
    %c0_i32_1 = arith.constant 0 : i32
    return %c0_i32, %c0_i32_0 : i32, i32
  }
  func.func @transform_6(%arg0: i32) -> (i32, i32) {
    %c0_i32 = arith.constant 0 : i32
    %c0_i32_0 = arith.constant 0 : i32
    %c0_i32_1 = arith.constant 0 : i32
    return %c0_i32, %c0_i32_0 : i32, i32
  }
  func.func @transform_7(%arg0: i32) -> (i32, i32) {
    %c0_i32 = arith.constant 0 : i32
    %c0_i32_0 = arith.constant 0 : i32
    %c0_i32_1 = arith.constant 0 : i32
    return %c0_i32, %c0_i32_0 : i32, i32
  }
}

</mosaic_0001>

<bundles_post_ra>
// kernel: smollm2_attention_forward.1
= control target key start
LH: loop header
LB: loop body
LE: loop exit
PB: predicated region body
PF: predicated region fallthrough
CT: control target
= control target key end

     0   :  { %12 = vsyncpa [#allocation3], 0  ;;  %s2599_s0 = inlined_call_operand.hbm [shape: f32[16,64], index: 0, kind: input, shape index: {}]   ;;  %s2600_s1 = inlined_call_operand.hbm [shape: f32[64,128], index: 1, kind: input, shape index: {}]   ;;  %s2601_s2 = inlined_call_operand.hbm [shape: f32[64,64], index: 2, kind: input, shape index: {}]   ;;  %s2602_s3 = inlined_call_operand.hbm [shape: f32[16,64], index: 3, kind: input, shape index: {}]   ;;  %s2603_s4 = inlined_call_operand.hbm [shape: f32[16,64], index: 4, kind: input, shape index: {}]   ;;  %s2604_s5 = inlined_call_operand.hbm [shape: f32[64,64], index: 5, kind: input, shape index: {}]   ;;  %s2605_s6 = inlined_call_operand.hbm [shape: f32[32,32], index: 6, kind: input, shape index: {}]   ;;  %s2606_s7 = inlined_call_operand.hbm [shape: f32[16,64], index: 7, kind: output, shape index: {}]  }
   0x1   :  { %13 = vsyncpa [#allocation6], 0 }
   0x2   :  { %14 = vsyncpa [#allocation9], 0 }
   0x3   :  { %15 = vsyncpa [#allocation12], 0 }
   0x4   :  { %16 = vsyncpa [#allocation4], 0  ;;  %s2336_s24 = smov [#allocation5]   ;;  %s2337_s26 = smov [#allocation8]  }
   0x5   :  { %s34_s25 = sshll.u32 %s2336_s24, 4  ;;  %s58_s27 = sshll.u32 %s2337_s26, 4  ;;  %s35_s25 = int_to_ptr.vmem [resolvable:$true] %s34_s25  ;;  %s59_s27 = int_to_ptr.vmem [resolvable:$true] %s58_s27 }
   0x6   :  { %s2174_s28 = scalar_lea.vmem %s35_s25, 1024  ;;  %p2179_p1 = scmp.lt.s32.totalorder %s35_s25, %s35_s25 }
   0x7   :  { %p2175_p0 = scmp.ne.s32.totalorder %s35_s25, %s2174_s28  ;;  %p2180_p2 = scmp.lt.s32.totalorder %s2174_s28, %s2174_s28 }
   0x9   :  { %p2181_p3 = por %p2180_p2, %p2179_p1 }
   0xb   :  { %p2182_p4 = pnand %p2181_p3, %p2175_p0 }
   0xd   :  { %2185 = shalt.err (!%p2182_p4)
}
   0xe   :  { %s2338_s29 = smov 128   ;;  %s2339_s30 = smov 8  }
   0xf   :  { %40 = dma.hbm_to_vmem [thread:$0]  %s2600_s1, 1024, %s35_s25, [#allocation6], %s2338_s29, %s2338_s29, %s2339_s30  }
  0x10   :  { %s2194_s10 = scalar_lea.vmem %s59_s27, 256  ;;  %p2199_p6 = scmp.lt.s32.totalorder %s59_s27, %s59_s27 }
  0x11   :  { %p2195_p5 = scmp.ne.s32.totalorder %s59_s27, %s2194_s10  ;;  %p2200_p7 = scmp.lt.s32.totalorder %s2194_s10, %s2194_s10 }
  0x13   :  { %p2201_p8 = por %p2200_p7, %p2199_p6 }
  0x15   :  { %p2202_p9 = pnand %p2201_p8, %p2195_p5 }
  0x17   :  { %2205 = shalt.err (!%p2202_p9)
}
  0x18   :  { %64 = dma.hbm_to_vmem [thread:$0]  %s2602_s3, 256, %s59_s27, [#allocation9], %s2338_s29, %s2338_s29, %s2339_s30  }
  0x19   :  { %s2340_s13 = smov [#allocation11]   ;;  %s2341_s15 = smov [#allocation2]  }
  0x1a   :  { %s82_s14 = sshll.u32 %s2340_s13, 4  ;;  %s22_s16 = sshll.u32 %s2341_s15, 4  ;;  %s83_s14 = int_to_ptr.vmem [resolvable:$true] %s82_s14  ;;  %s23_s16 = int_to_ptr.vmem [resolvable:$true] %s22_s16 }
  0x1b   :  { %s2214_s1 = scalar_lea.vmem %s83_s14, 1024  ;;  %p2219_p11 = scmp.lt.s32.totalorder %s83_s14, %s83_s14 }
  0x1c   :  { %p2215_p10 = scmp.ne.s32.totalorder %s83_s14, %s2214_s1  ;;  %p2220_p12 = scmp.lt.s32.totalorder %s2214_s1, %s2214_s1 }
  0x1e   :  { %p2221_p13 = por %p2220_p12, %p2219_p11 }
  0x20   :  { %p2222_p0 = pnand %p2221_p13, %p2215_p10 }
  0x22   :  { %2225 = shalt.err (!%p2222_p0)
}
  0x23   :  { %88 = dma.hbm_to_vmem [thread:$0]  %s2604_s5, 1024, %s83_s14, [#allocation12], %s2338_s29, %s2338_s29, %s2339_s30  }
  0x24   :  { %s2234_s3 = scalar_lea.vmem %s23_s16, 256  ;;  %p2239_p2 = scmp.lt.s32.totalorder %s23_s16, %s23_s16 }
  0x25   :  { %p2235_p1 = scmp.ne.s32.totalorder %s23_s16, %s2234_s3  ;;  %p2240_p3 = scmp.lt.s32.totalorder %s2234_s3, %s2234_s3 }
  0x27   :  { %p2241_p4 = por %p2240_p3, %p2239_p2 }
  0x29   :  { %p2242_p5 = pnand %p2241_p4, %p2235_p1 }
  0x2b   :  { %2245 = shalt.err (!%p2242_p5)
}
  0x2c   :  { %28 = dma.hbm_to_vmem [thread:$0]  %s2599_s0, 256, %s23_s16, [#allocation3], %s2338_s29, %s2338_s29, %s2339_s30  }
  0x2d   :  { %s2342_s21 = smov [#allocation7]   ;;  %s2343_s23 = smov [#allocation10]  }
  0x2e   :  { %s46_s22 = sshll.u32 %s2342_s21, 4  ;;  %s70_s24 = sshll.u32 %s2343_s23, 4  ;;  %s47_s22 = int_to_ptr.vmem [resolvable:$true] %s46_s22  ;;  %s71_s24 = int_to_ptr.vmem [resolvable:$true] %s70_s24 }
  0x2f   :  { %s2254_s5 = scalar_lea.vmem %s47_s22, 1024  ;;  %p2259_p7 = scmp.lt.s32.totalorder %s47_s22, %s47_s22 }
  0x30   :  { %p2255_p6 = scmp.ne.s32.totalorder %s47_s22, %s2254_s5  ;;  %p2260_p8 = scmp.lt.s32.totalorder %s2254_s5, %s2254_s5 }
  0x32   :  { %p2261_p9 = por %p2260_p8, %p2259_p7 }
  0x34   :  { %p2262_p10 = pnand %p2261_p9, %p2255_p6 }
  0x36   :  { %2265 = shalt.err (!%p2262_p10)
}
  0x37   :  { %52 = dma.hbm_to_vmem [thread:$0]  %s2601_s2, 1024, %s47_s22, [#allocation6], %s2338_s29, %s2338_s29, %s2339_s30  }
  0x38   :  { %s2274_s0 = scalar_lea.vmem %s71_s24, 256  ;;  %p2279_p12 = scmp.lt.s32.totalorder %s71_s24, %s71_s24 }
  0x39   :  { %p2275_p11 = scmp.ne.s32.totalorder %s71_s24, %s2274_s0  ;;  %p2280_p13 = scmp.lt.s32.totalorder %s2274_s0, %s2274_s0 }
  0x3b   :  { %p2281_p0 = por %p2280_p13, %p2279_p12 }
  0x3d   :  { %p2282_p1 = pnand %p2281_p0, %p2275_p11 }
  0x3f   :  { %2285 = shalt.err (!%p2282_p1)
}
  0x40   :  { %76 = dma.hbm_to_vmem [thread:$0]  %s2603_s4, 256, %s71_s24, [#allocation9], %s2338_s29, %s2338_s29, %s2339_s30  }
  0x41   :  { %s2344_s8 = smov [#allocation13]  }
  0x42   :  { %s94_s9 = sshll.u32 %s2344_s8, 4  ;;  %s95_s9 = int_to_ptr.vmem [resolvable:$true] %s94_s9 }
  0x43   :  { %s2294_s10 = scalar_lea.vmem %s95_s9, 512  ;;  %p2299_p3 = scmp.lt.s32.totalorder %s95_s9, %s95_s9 }
  0x44   :  { %p2295_p2 = scmp.ne.s32.totalorder %s95_s9, %s2294_s10  ;;  %p2300_p4 = scmp.lt.s32.totalorder %s2294_s10, %s2294_s10 }
  0x46   :  { %p2301_p5 = por %p2300_p4, %p2299_p3 }
  0x48   :  { %p2302_p6 = pnand %p2301_p5, %p2295_p2 }
  0x4a   :  { %2305 = shalt.err (!%p2302_p6)
}
  0x4b   :  { %100 = dma.hbm_to_vmem [thread:$0]  %s2605_s6, 512, %s95_s9, [#allocation12], %s2338_s29, %s2338_s29, %s2339_s30  }
  0x4c   :  { %2326 = dma.done.wait [#allocation3], 256  }
  0x4d   :  { %2327 = vsyncadd [#allocation3], 4294967040 }
  0x4e   :  { %2328 = dma.done.wait [#allocation6], 2048  }
  0x4f   :  { %2329 = vsyncadd [#allocation6], 4294965248 }
  0x50   :  { %2330 = dma.done.wait [#allocation9], 512  }
  0x51   :  { %2331 = vsyncadd [#allocation9], 4294966784 }
  0x52   :  { %2332 = dma.done.wait [#allocation12], 1536  }
  0x53   :  { %2333 = vsyncadd [#allocation12], 4294965760  ;;  %v131_v0 = vld [vmem:[#allocation5 + $0x38] sm:$0xff]  ;;  %v130_v1 = vld [vmem:[#allocation5 + $0x30] sm:$0xff]  ;;  %vm132_vm0 = vcmask 523264   ;;  %s2345_s4 = smov 64  }
  0x54   :  { %1967 = vmatprep.subr.mxu0 %v131_v0  ;;  %v129_v2 = vld [vmem:[#allocation5 + $0x28] sm:$0xff]  ;;  %v122_v3 = vld [vmem:[#allocation2] sm:$0xff]  ;;  %v2438_v4 = vld [vmem:[#allocation8] sm:$0xff]  ;;  %vm331_vm1 = vcmask 261120   ;;  %v2346_v42 = vmov 0.0   ;;  %s2347_s6 = smov 112  }
  0x55   :  { %1968 = vmatpush3.msra.mxu0 %v131_v0  ;;  %1983 = vmatprep.mubr.msk.f32.mxu0 %vm132_vm0, %v122_v3  ;;  %v227_v5 = vld [vmem:[#allocation11 + $0x38] sm:$0xff]  ;;  %v128_v6 = vld [vmem:[#allocation5 + $0x20] sm:$0xff]  ;;  %v226_v7 = vld [vmem:[#allocation11 + $0x30] sm:$0xff]  ;;  %s2348_s12 = smov 96   ;;  %vm2349_vm2 = vmmov 0   ;;  %s2350_s13 = smov 48  }
  0x56   :  { %1969 = vmatprep.subr.mxu0 %v130_v1  ;;  %315 = vrot.lane.b32.xlu1 %v2438_v4, %s2345_s4  ;;  %v127_v8 = vld [vmem:[#allocation5 + $0x18] sm:$0xff]  ;;  %v225_v9 = vld [vmem:[#allocation11 + $0x28] sm:$0xff]  ;;  %v126_v10 = vld [vmem:[#allocation5 + $0x10] sm:$0xff]  ;;  %s2351_s14 = smov 80   ;;  %vm426_vm3 = vcmask 130048   ;;  %vm503_vm4 = vcmask 64512  }
  0x57   :  { %1970 = vmatpush3.msra.mxu0 %v130_v1  ;;  %1986 = vmatprep.subr.mxu1 %v227_v5  ;;  %v224_v11 = vld [vmem:[#allocation11 + $0x20] sm:$0xff]  ;;  %v125_v12 = vld [vmem:[#allocation5 + $0x8] sm:$0xff]  ;;  %v223_v13 = vld [vmem:[#allocation11 + $0x18] sm:$0xff]  ;;  %s2352_s15 = smov 16   ;;  %s2353_s16 = smov 32   ;;  %vm1089_vm5 = vcmask 392192  }
  0x58   :  { %1971 = vmatprep.subr.mxu0 %v129_v2  ;;  %1987 = vmatpush3.msra.mxu1 %v227_v5  ;;  %v124_v14 = vld [vmem:[#allocation5] sm:$0xff]  ;;  %v222_v15 = vld [vmem:[#allocation11 + $0x10] sm:$0xff]  ;;  %v123_v16 = vld [vmem:[#allocation2 + $0x8] sm:$0xff]  ;;  %s2354_s1 = smov [#allocation14]  }
  0x59   :  { %1972 = vmatpush3.msra.mxu0 %v129_v2  ;;  %1988 = vmatprep.subr.mxu1 %v226_v7  ;;  %v221_v17 = vld [vmem:[#allocation11 + $0x8] sm:$0xff]  ;;  %v220_v18 = vld [vmem:[#allocation11] sm:$0xff]  ;;  %v326_v19 = vld [vmem:[#allocation13 + $0x18] sm:$0xff]  ;;  %s1852_s17 = sshll.u32 %s2354_s1, 4  ;;  %s1853_s17 = int_to_ptr.vmem [resolvable:$true] %s1852_s17 }
  0x5a   :  { %1973 = vmatprep.subr.mxu0 %v128_v6  ;;  %1989 = vmatpush3.msra.mxu1 %v226_v7  ;;  %v325_v22 = vld [vmem:[#allocation13 + $0x10] sm:$0xff]  ;;  %v324_v23 = vld [vmem:[#allocation13 + $0x8] sm:$0xff]  ;;  %v323_v24 = vld [vmem:[#allocation13] sm:$0xff]  ;;  %s2306_s18 = scalar_lea.vmem %s1853_s17, 256  ;;  %p2311_p8 = scmp.lt.s32.totalorder %s1853_s17, %s1853_s17 }
  0x5b   :  { %1974 = vmatpush3.msra.mxu0 %v128_v6  ;;  %1990 = vmatprep.subr.mxu1 %v225_v9  ;;  %v215_v25 = vld [vmem:[#allocation8 + $0x8] sm:$0xff]  ;;  %v217_v28 = vld [vmem:[#allocation10 + $0x8] sm:$0xff]  ;;  %v216_v35 = vld [vmem:[#allocation10] sm:$0xff]  ;;  %p2307_p7 = scmp.ne.s32.totalorder %s1853_s17, %s2306_s18  ;;  %p2312_p9 = scmp.lt.s32.totalorder %s2306_s18, %s2306_s18 }
  0x5c   :  { %1975 = vmatprep.subr.mxu0 %v127_v8  ;;  %1991 = vmatpush3.msra.mxu1 %v225_v9 }
  0x5d   :  { %1976 = vmatpush3.msra.mxu0 %v127_v8  ;;  %1992 = vmatprep.subr.mxu1 %v224_v11  ;;  %p2313_p10 = por %p2312_p9, %p2311_p8 }
  0x5e   :  { %1977 = vmatprep.subr.mxu0 %v126_v10  ;;  %1993 = vmatpush3.msra.mxu1 %v224_v11 }
  0x5f   :  { %1978 = vmatpush3.msra.mxu0 %v126_v10  ;;  %1994 = vmatprep.subr.mxu1 %v223_v13  ;;  %p2314_p11 = pnand %p2313_p10, %p2307_p7 }
  0x60   :  { %1979 = vmatprep.subr.mxu0 %v125_v12  ;;  %1995 = vmatpush3.msra.mxu1 %v223_v13 }
  0x61   :  { %1980 = vmatpush3.msra.mxu0 %v125_v12  ;;  %1996 = vmatprep.subr.mxu1 %v222_v15 }
  0x62   :  { %1981 = vmatprep.subr.mxu0 %v124_v14  ;;  %1997 = vmatpush3.msra.mxu1 %v222_v15 }
  0x63   :  { %1982 = vmatpush3.msra.mxu0 %v124_v14  ;;  %1998 = vmatprep.subr.mxu1 %v221_v17 }
  0x64   :  { %1984 = vmatmul.mubr.msk.f32.vlgmr.msra.gmra.mxu0 %vm132_vm0, %v123_v16  ;;  %1999 = vmatpush3.msra.mxu1 %v221_v17 }
  0x65   :  { %2000 = vmatprep.subr.mxu1 %v220_v18  ;;  %2026 = vmatprep.subr.mxu0 %v2346_v42 }
  0x66   :  { %2001 = vmatpush3.msra.mxu1 %v220_v18  ;;  %2028 = vmatprep.mubr.msk.f32.mxu0 %vm2349_vm2, %v2346_v42 }
  0x67   :  { %2005 = vmatprep.subr.mxu1 %v326_v19 }
  0xc8   :  { %v316_v43 = vpop.permute.xlu1 %315 }
 0x124   :  { %v2443_v20 = vpop.f32.mrf.mxu0 }
 0x125   :  { %v219_v30 = vmul.f32 %v2443_v20, %v215_v25 }
 0x126   :  { %v2445_v21 = vpop.f32.mrf.mxu0 }
 0x127   :  { %327 = vrot.lane.b32.xlu0 %v2445_v21, %s2345_s4  ;;  %2002 = vmatprep.mubr.msk.f32.mxu1 %vm132_vm0, %v2445_v21  ;;  %v218_v40 = vmul.f32 %v2438_v4, %v2445_v21  ;;  %v321_v44 = vmul.f32 %v316_v43, %v2445_v21 }
 0x128   :  { %2003 = vmatmul.mubr.msk.f32.vlgmr.msra.gmra.mxu1 %vm132_vm0, %v2443_v20 }
 0x129   :  { %2006 = vmatpush3.msra.mxu1 %v326_v19 }
 0x12a   :  { %2007 = vmatprep.subr.mxu1 %v325_v22 }
 0x12b   :  { %329 = vrot.lane.b32.xlu0 %v2443_v20, %s2345_s4  ;;  %2008 = vmatpush3.msra.mxu1 %v325_v22 }
 0x12c   :  { %2009 = vmatprep.subr.mxu1 %v324_v23 }
 0x12d   :  { %2010 = vmatpush3.msra.mxu1 %v324_v23 }
 0x12e   :  { %2011 = vmatprep.subr.mxu1 %v323_v24 }
 0x12f   :  { %317 = vrot.lane.b32.xlu0 %v215_v25, %s2345_s4  ;;  %2012 = vmatpush3.msra.mxu1 %v323_v24 }
 0x130   :  { %2016 = vmatprep.subr.mxu1 %v2346_v42 }
 0x199   :  { %v328_v26 = vpop.permute.xlu0 %327 }
 0x19a   :  { %2013 = vmatprep.mubr.msk.f32.mxu1 %vm331_vm1, %v328_v26 }
 0x19d   :  { %v330_v27 = vpop.permute.xlu0 %329 }
 0x19e   :  { %2014 = vmatmul.mubr.msk.f32.vlgmr.msra.gmra.mxu1 %vm331_vm1, %v330_v27 }
 0x19f   :  { %2018 = vmatprep.mubr.msk.f32.mxu1 %vm2349_vm2, %v2346_v42 }
 0x1a1   :  { %v318_v45 = vpop.permute.xlu0 %317 }
 0x1a2   :  { %v322_v48 = vmul.f32 %v2443_v20, %v318_v45 }
 0x1e8   :  { %v2004_v29 = vpop.f32.mrf.mxu1 }
 0x1e9   :  { %v310_v31 = vmul.f32 %v2004_v29, %v217_v28 }
 0x1ea   :  { %v300_v33 = vpop.f32.mrf.mxu1 }
 0x1eb   :  { %v2459_v32 = vadd.f32 %v310_v31, %v219_v30  ;;  %v309_v38 = vmul.f32 %v300_v33, %v216_v35 }
 0x1ed   :  { %v311_v41 = vadd.f32 %v309_v38, %v218_v40 }
 0x25e   :  { %v2015_v34 = vpop.f32.mrf.mxu1 }
 0x25f   :  { %v412_v39 = vmul.f32 %v2015_v34, %v217_v28 }
 0x260   :  { %v402_v36 = vpop.f32.mrf.mxu1 }
 0x261   :  { %v411_v37 = vmul.f32 %v402_v36, %v216_v35 }
 0x263   :  { %415 = vrot.lane.b32.xlu1 %v411_v37, %s2345_s4 }
 0x267   :  { %417 = vrot.lane.b32.xlu1 %v412_v39, %s2345_s4 }
 0x26b   :  { %591 = vrot.lane.b32.xlu1 %v311_v41, %s2347_s6 }
 0x26f   :  { %750 = vrot.lane.b32.xlu1 %v311_v41, %s2348_s12 }
 0x2d5   :  { %v416_v46 = vpop.permute.xlu1 %415 }
 0x2d6   :  { %v421_v47 = vadd.f32 %v416_v46, %v321_v44 }
 0x2d8   :  { %424 = vrot.lane.b32.xlu0 %v421_v47, %s2345_s4 }
 0x2d9   :  { %v418_v49 = vpop.permute.xlu1 %417 }
 0x2da   :  { %v422_v50 = vadd.f32 %v418_v49, %v322_v48 }
 0x2dc   :  { %752 = vrot.lane.b32.xlu0 %v421_v47, %s2350_s13  ;;  %1092 = vrot.lane.b32.xlu1 %v422_v50, %s2345_s4 }
 0x2dd   :  { %v592_v52 = vpop.permute.xlu1 %591 }
 0x2e0   :  { %916 = vrot.lane.b32.xlu0 %v311_v41, %s2351_s14  ;;  %1418 = vrot.lane.b32.xlu1 %v422_v50, %s2350_s13 }
 0x2e1   :  { %v751_v54 = vpop.permute.xlu1 %750 }
 0x2e4   :  { %1257 = vrot.lane.b32.xlu0 %v2459_v32, %s2347_s6  ;;  %1582 = vrot.lane.b32.xlu1 %v2459_v32, %s2351_s14 }
 0x2e8   :  { %1416 = vrot.lane.b32.xlu0 %v2459_v32, %s2348_s12 }
 0x34a   :  { %v425_v51 = vpop.permute.xlu0 %424 }
 0x34b   :  { %2017 = vmatpush3.xpose.msk.msra.mxu1 %vm426_vm3, %v425_v51  ;;  %2027 = vmatpush3.xpose.msk.msra.mxu0 %vm426_vm3, %v425_v51 }
 0x34c   :  { %2036 = vmatprep.subr.mxu0 %v2346_v42  ;;  %2021 = vmatprep.subr.mxu1 %v2346_v42 }
 0x34e   :  { %v753_v53 = vpop.permute.xlu0 %752  ;;  %2029 = vmatmul.mubr.msk.f32.vlgmr.msra.gmra.mxu0 %vm426_vm3, %v592_v52  ;;  %2019 = vmatmul.mubr.msk.f32.vlgmr.msra.gmra.mxu1 %vm426_vm3, %v311_v41  ;;  %v1093_v56 = vpop.permute.xlu1 %1092 }
 0x34f   :  { %2037 = vmatpush3.xpose.msk.msra.mxu0 %vm426_vm3, %v753_v53  ;;  %2038 = vmatprep.mubr.msk.f32.mxu0 %vm2349_vm2, %v2346_v42 }
 0x350   :  { %2046 = vmatprep.subr.mxu0 %v2346_v42  ;;  %2023 = vmatprep.mubr.msk.f32.mxu1 %vm2349_vm2, %v2346_v42 }
 0x352   :  { %2039 = vmatmul.mubr.msk.f32.vlgmr.msra.gmra.mxu0 %vm426_vm3, %v751_v54  ;;  %v917_v55 = vpop.permute.xlu0 %916  ;;  %v1419_v58 = vpop.permute.xlu1 %1418 }
 0x353   :  { %2047 = vmatpush3.xpose.msk.msra.mxu0 %vm426_vm3, %v753_v53  ;;  %2048 = vmatprep.mubr.msk.f32.mxu0 %vm2349_vm2, %v2346_v42 }
 0x354   :  { %2056 = vmatprep.subr.mxu0 %v2346_v42 }
 0x356   :  { %2049 = vmatmul.mubr.msk.f32.vlgmr.msra.gmra.mxu0 %vm426_vm3, %v917_v55  ;;  %v1258_v57 = vpop.permute.xlu0 %1257  ;;  %v1583_v60 = vpop.permute.xlu1 %1582 }
 0x357   :  { %2057 = vmatpush3.xpose.msk.msra.mxu0 %vm426_vm3, %v1093_v56  ;;  %2058 = vmatprep.mubr.msk.f32.mxu0 %vm2349_vm2, %v2346_v42 }
 0x358   :  { %2066 = vmatprep.subr.mxu0 %v2346_v42 }
 0x35a   :  { %2059 = vmatmul.mubr.msk.f32.vlgmr.msra.gmra.mxu0 %vm426_vm3, %v2459_v32  ;;  %v1417_v59 = vpop.permute.xlu0 %1416 }
 0x35b   :  { %2067 = vmatpush3.xpose.msk.msra.mxu0 %vm426_vm3, %v1093_v56  ;;  %2068 = vmatprep.mubr.msk.f32.mxu0 %vm2349_vm2, %v2346_v42 }
 0x35c   :  { %2076 = vmatprep.subr.mxu0 %v2346_v42 }
 0x35e   :  { %2069 = vmatmul.mubr.msk.f32.vlgmr.msra.gmra.mxu0 %vm426_vm3, %v1258_v57 }
 0x35f   :  { %2077 = vmatpush3.xpose.msk.msra.mxu0 %vm426_vm3, %v1419_v58  ;;  %2078 = vmatprep.mubr.msk.f32.mxu0 %vm2349_vm2, %v2346_v42 }
 0x360   :  { %2086 = vmatprep.subr.mxu0 %v2346_v42 }
 0x362   :  { %2079 = vmatmul.mubr.msk.f32.vlgmr.msra.gmra.mxu0 %vm426_vm3, %v1417_v59 }
 0x363   :  { %2087 = vmatpush3.xpose.msk.msra.mxu0 %vm426_vm3, %v1419_v58  ;;  %2088 = vmatprep.mubr.msk.f32.mxu0 %vm2349_vm2, %v2346_v42 }
 0x366   :  { %2089 = vmatmul.mubr.msk.f32.vlgmr.msra.gmra.mxu0 %vm426_vm3, %v1583_v60 }
 0x40e   :  { %v498_v61 = vpop.f32.mrf.mxu1  ;;  %v661_v62 = vpop.f32.mrf.mxu0 }
 0x40f   :  { %v502_v63 = vmul.f32 0.25, %v498_v61  ;;  %v665_v0 = vmul.f32 0.25, %v661_v62 }
 0x410   :  { %v2020_v1 = vpop.f32.mrf.mxu1  ;;  %v2030_v2 = vpop.f32.mrf.mxu0 }
 0x411   :  { %v666_v3 = vsel %vm503_vm4, %v665_v0, -inf  ;;  %v504_v4 = vsel %vm503_vm4, %v502_v63, -inf }
 0x412   :  { %667 = vmax.xlane.f32.xlu1 %v666_v3  ;;  %v824_v5 = vpop.f32.mrf.mxu0  ;;  %505 = vmax.xlane.f32.xlu0 %v504_v4 }
 0x413   :  { %v828_v6 = vmul.f32 0.25, %v824_v5 }
 0x414   :  { %v2040_v7 = vpop.f32.mrf.mxu0 }
 0x415   :  { %v829_v8 = vsel %vm503_vm4, %v828_v6, -inf }
 0x416   :  { %v986_v9 = vpop.f32.mrf.mxu0  ;;  %830 = vmax.xlane.f32.xlu0 %v829_v8 }
 0x417   :  { %v990_v10 = vmul.f32 0.25, %v986_v9 }
 0x418   :  { %v2050_v11 = vpop.f32.mrf.mxu0 }
 0x419   :  { %v991_v12 = vsel %vm503_vm4, %v990_v10, -inf }
 0x41a   :  { %v1165_v13 = vpop.f32.mrf.mxu0  ;;  %992 = vmax.xlane.f32.xlu0 %v991_v12 }
 0x41b   :  { %v1169_v14 = vmul.f32 0.25, %v1165_v13 }
 0x41c   :  { %v2060_v15 = vpop.f32.mrf.mxu0 }
 0x41d   :  { %v1170_v16 = vsel %vm503_vm4, %v1169_v14, -inf }
 0x41e   :  { %1171 = vmax.xlane.f32.xlu1 %v1170_v16  ;;  %v1327_v17 = vpop.f32.mrf.mxu0 }
 0x41f   :  { %v1331_v18 = vmul.f32 0.25, %v1327_v17 }
 0x420   :  { %v2070_v19 = vpop.f32.mrf.mxu0 }
 0x421   :  { %v1332_v22 = vsel %vm503_vm4, %v1331_v18, -inf }
 0x422   :  { %v1490_v23 = vpop.f32.mrf.mxu0  ;;  %1333 = vmax.xlane.f32.xlu0 %v1332_v22 }
 0x423   :  { %v1494_v24 = vmul.f32 0.25, %v1490_v23 }
 0x424   :  { %v2080_v25 = vpop.f32.mrf.mxu0 }
 0x425   :  { %v1495_v26 = vsel %vm503_vm4, %v1494_v24, -inf }
 0x426   :  { %1496 = vmax.xlane.f32.xlu1 %v1495_v26  ;;  %v1652_v27 = vpop.f32.mrf.mxu0 }
 0x427   :  { %v1656_v28 = vmul.f32 0.25, %v1652_v27 }
 0x428   :  { %v2090_v29 = vpop.f32.mrf.mxu0 }
 0x429   :  { %v1657_v30 = vsel %vm503_vm4, %v1656_v28, -inf }
 0x42a   :  { %1658 = vmax.xlane.f32.xlu0 %v1657_v30 }
 0x437   :  { %840 = vrot.lane.b32.xlu1 %v2445_v21, %s2352_s15 }
 0x440   :  { %515 = vrot.lane.b32.xlu0 %v2445_v21, %s2353_s16 }
 0x49b   :  { %v668_v31 = vpop.xlane.xlu1 %667  ;;  %v506_v32 = vpop.xlane.xlu0 %505 }
 0x49c   :  { %v669_v33 = vsub.f32 %v665_v0, %v668_v31  ;;  %v507_v34 = vsub.f32 %v502_v63, %v506_v32 }
 0x49e   :  { %v670_v35 = vmul.f32 1.442695, %v669_v33  ;;  %v508_v36 = vmul.f32 1.442695, %v507_v34 }
 0x49f   :  { %v831_v37 = vpop.xlane.xlu0 %830 }
 0x4a0   :  { %2134 = vpow2.f32 %v670_v35  ;;  %v832_v38 = vsub.f32 %v828_v6, %v831_v37  ;;  %v1763_v37 = vld [vmem:[#allocation7 + $0x38] sm:$0xff] }
 0x4a1   :  { %2136 = vpow2.f32 %v508_v36  ;;  %2096 = vmatprep.subr.mxu0 %v1763_v37 }
 0x4a2   :  { %v833_v39 = vmul.f32 1.442695, %v832_v38  ;;  %v1762_v38 = vld [vmem:[#allocation7 + $0x30] sm:$0xff]  ;;  %2097 = vmatpush3.msra.mxu0 %v1763_v37 }
 0x4a3   :  { %v993_v40 = vpop.xlane.xlu0 %992  ;;  %2098 = vmatprep.subr.mxu0 %v1762_v38 }
 0x4a4   :  { %2138 = vpow2.f32 %v833_v39  ;;  %v994_v41 = vsub.f32 %v990_v10, %v993_v40  ;;  %v1761_v40 = vld [vmem:[#allocation7 + $0x28] sm:$0xff]  ;;  %2099 = vmatpush3.msra.mxu0 %v1762_v38 }
 0x4a5   :  { %2100 = vmatprep.subr.mxu0 %v1761_v40 }
 0x4a6   :  { %v995_v43 = vmul.f32 1.442695, %v994_v41  ;;  %2101 = vmatpush3.msra.mxu0 %v1761_v40 }
 0x4a7   :  { %v1172_v44 = vpop.xlane.xlu1 %1171 }
 0x4a8   :  { %2140 = vpow2.f32 %v995_v43  ;;  %v1173_v45 = vsub.f32 %v1169_v14, %v1172_v44  ;;  %v1760_v43 = vld [vmem:[#allocation7 + $0x20] sm:$0xff] }
 0x4a9   :  { %2102 = vmatprep.subr.mxu0 %v1760_v43 }
 0x4aa   :  { %v1174_v46 = vmul.f32 1.442695, %v1173_v45  ;;  %2103 = vmatpush3.msra.mxu0 %v1760_v43  ;;  %v1759_v45 = vld [vmem:[#allocation7 + $0x18] sm:$0xff] }
 0x4ab   :  { %v1334_v21 = vpop.xlane.xlu0 %1333  ;;  %2104 = vmatprep.subr.mxu0 %v1759_v45 }
 0x4ac   :  { %2142 = vpow2.f32 %v1174_v46  ;;  %v1335_v47 = vsub.f32 %v1331_v18, %v1334_v21  ;;  %v1758_v46 = vld [vmem:[#allocation7 + $0x10] sm:$0xff]  ;;  %2105 = vmatpush3.msra.mxu0 %v1759_v45 }
 0x4ad   :  { %v2135_v48 = vpop.eup %2134  ;;  %2106 = vmatprep.subr.mxu0 %v1758_v46 }
 0x4ae   :  { %v2137_v49 = vpop.eup %2136  ;;  %v1336_v50 = vmul.f32 1.442695, %v1335_v47  ;;  %v672_v51 = vsel %vm503_vm4, %v2135_v48, 0.0  ;;  %2107 = vmatpush3.msra.mxu0 %v1758_v46 }
 0x4af   :  { %v1497_v52 = vpop.xlane.xlu1 %1496  ;;  %673 = vadd.xlane.f32.xlu0 %v672_v51  ;;  %v510_v53 = vsel %vm503_vm4, %v2137_v49, 0.0 }
 0x4b0   :  { %2144 = vpow2.f32 %v1336_v50  ;;  %v1498_v54 = vsub.f32 %v1494_v24, %v1497_v52  ;;  %511 = vadd.xlane.f32.xlu1 %v510_v53 }
 0x4b1   :  { %v2139_v55 = vpop.eup %2138 }
 0x4b2   :  { %v1499_v56 = vmul.f32 1.442695, %v1498_v54  ;;  %v835_v57 = vsel %vm503_vm4, %v2139_v55, 0.0 }
 0x4b3   :  { %v1659_v58 = vpop.xlane.xlu0 %1658  ;;  %v841_v8 = vpop.permute.xlu1 %840 }
 0x4b4   :  { %2146 = vpow2.f32 %v1499_v56  ;;  %836 = vadd.xlane.f32.xlu1 %v835_v57  ;;  %v1660_v59 = vsub.f32 %v1656_v28, %v1659_v58 }
 0x4b5   :  { %v2141_v60 = vpop.eup %2140 }
 0x4b6   :  { %v1661_v61 = vmul.f32 1.442695, %v1660_v59  ;;  %v997_v62 = vsel %vm503_vm4, %v2141_v60, 0.0 }
 0x4b7   :  { %998 = vadd.xlane.f32.xlu0 %v997_v62  ;;  %v516_v63 = vpop.permute.xlu0 %515 }
 0x4b8   :  { %2148 = vpow2.f32 %v1661_v61  ;;  %2022 = vmatpush3.msra.mxu1 %v516_v63 }
 0x4b9   :  { %v2143_v0 = vpop.eup %2142  ;;  %2031 = vmatprep.subr.mxu1 %v2346_v42 }
 0x4ba   :  { %v1176_v1 = vsel %vm503_vm4, %v2143_v0, 0.0 }
 0x4bb   :  { %1177 = vadd.xlane.f32.xlu1 %v1176_v1 }
 0x4bd   :  { %v2145_v2 = vpop.eup %2144 }
 0x4be   :  { %v1338_v3 = vsel %vm503_vm4, %v2145_v2, 0.0 }
 0x4bf   :  { %1339 = vadd.xlane.f32.xlu0 %v1338_v3 }
 0x4c1   :  { %v2537_v4 = vpop.eup %2146 }
 0x4c2   :  { %v1501_v5 = vsel %vm503_vm4, %v2537_v4, 0.0 }
 0x4c3   :  { %1502 = vadd.xlane.f32.xlu1 %v1501_v5 }
 0x4c5   :  { %v2541_v6 = vpop.eup %2148 }
 0x4c6   :  { %v1663_v7 = vsel %vm503_vm4, %v2541_v6, 0.0 }
 0x4c7   :  { %1664 = vadd.xlane.f32.xlu1 %v1663_v7 }
 0x4d5   :  { %1181 = vrot.lane.b32.xlu0 %v2443_v20, %s2353_s16 }
 0x4d8   :  { %1506 = vrot.lane.b32.xlu1 %v2443_v20, %s2352_s15 }
 0x538   :  { %v674_v10 = vpop.xlane.xlu0 %673 }
 0x539   :  { %v512_v9 = vpop.xlane.xlu1 %511 }
 0x53a   :  { %2150 = vrcp.f32 %v512_v9 }
 0x53b   :  { %2152 = vrcp.f32 %v674_v10 }
 0x53d   :  { %v837_v11 = vpop.xlane.xlu1 %836 }
 0x53e   :  { %2154 = vrcp.f32 %v837_v11 }
 0x540   :  { %v999_v12 = vpop.xlane.xlu0 %998 }
 0x541   :  { %2156 = vrcp.f32 %v999_v12 }
 0x544   :  { %v1178_v13 = vpop.xlane.xlu1 %1177 }
 0x545   :  { %2158 = vrcp.f32 %v1178_v13 }
 0x547   :  { %v2151_v14 = vpop.eup %2150 }
 0x548   :  { %v514_v15 = vmul.f32 %v2151_v14, %v2137_v49  ;;  %v2153_v16 = vpop.eup %2152  ;;  %v1340_v17 = vpop.xlane.xlu0 %1339  ;;  %v1756_v49 = vld [vmem:[#allocation7] sm:$0xff] }
 0x549   :  { %2160 = vrcp.f32 %v1340_v17  ;;  %v676_v18 = vmul.f32 %v2153_v16, %v2135_v48  ;;  %v1757_v48 = vld [vmem:[#allocation7 + $0x8] sm:$0xff] }
 0x54a   :  { %2024 = vmatmul.mubr.msk.f32.vlgmr.msra.gmra.mxu1 %vm503_vm4, %v514_v15  ;;  %2108 = vmatprep.subr.mxu0 %v1757_v48 }
 0x54b   :  { %2032 = vmatpush3.msra.mxu1 %v516_v63  ;;  %2033 = vmatprep.mubr.msk.f32.mxu1 %vm2349_vm2, %v2346_v42  ;;  %v2155_v19 = vpop.eup %2154 }
 0x54c   :  { %v1503_v20 = vpop.xlane.xlu1 %1502  ;;  %2041 = vmatprep.subr.mxu1 %v2346_v42  ;;  %v839_v22 = vmul.f32 %v2155_v19, %v2139_v55  ;;  %v1182_v27 = vpop.permute.xlu0 %1181  ;;  %2109 = vmatpush3.msra.mxu0 %v1757_v48 }
 0x54d   :  { %2162 = vrcp.f32 %v1503_v20  ;;  %2110 = vmatprep.subr.mxu0 %v1756_v49 }
 0x54e   :  { %2034 = vmatmul.mubr.msk.f32.vlgmr.msra.gmra.mxu1 %vm503_vm4, %v676_v18  ;;  %v2157_v23 = vpop.eup %2156  ;;  %2111 = vmatpush3.msra.mxu0 %v1756_v49 }
 0x54f   :  { %2042 = vmatpush3.msra.mxu1 %v841_v8  ;;  %2043 = vmatprep.mubr.msk.f32.mxu1 %vm2349_vm2, %v2346_v42  ;;  %v1001_v25 = vmul.f32 %v2157_v23, %v2141_v60 }
 0x550   :  { %2051 = vmatprep.subr.mxu1 %v2346_v42  ;;  %v1665_v24 = vpop.xlane.xlu1 %1664 }
 0x551   :  { %2164 = vrcp.f32 %v1665_v24 }
 0x552   :  { %2044 = vmatmul.mubr.msk.f32.vlgmr.msra.gmra.mxu1 %vm503_vm4, %v839_v22  ;;  %v2159_v26 = vpop.eup %2158 }
 0x553   :  { %2052 = vmatpush3.msra.mxu1 %v841_v8  ;;  %2053 = vmatprep.mubr.msk.f32.mxu1 %vm2349_vm2, %v2346_v42  ;;  %v1180_v28 = vmul.f32 %v2159_v26, %v2143_v0 }
 0x554   :  { %2061 = vmatprep.subr.mxu1 %v2346_v42  ;;  %v1507_v32 = vpop.permute.xlu1 %1506 }
 0x556   :  { %2054 = vmatmul.mubr.msk.f32.vlgmr.msra.gmra.mxu1 %vm503_vm4, %v1001_v25  ;;  %v2161_v29 = vpop.eup %2160 }
 0x557   :  { %2062 = vmatpush3.msra.mxu1 %v1182_v27  ;;  %2063 = vmatprep.mubr.msk.f32.mxu1 %vm2349_vm2, %v2346_v42  ;;  %v1342_v30 = vmul.f32 %v2161_v29, %v2145_v2 }
 0x558   :  { %2071 = vmatprep.subr.mxu1 %v2346_v42 }
 0x55a   :  { %2064 = vmatmul.mubr.msk.f32.vlgmr.msra.gmra.mxu1 %vm503_vm4, %v1180_v28  ;;  %v2163_v31 = vpop.eup %2162 }
 0x55b   :  { %2072 = vmatpush3.msra.mxu1 %v1182_v27  ;;  %2073 = vmatprep.mubr.msk.f32.mxu1 %vm2349_vm2, %v2346_v42  ;;  %v1505_v33 = vmul.f32 %v2163_v31, %v2537_v4 }
 0x55c   :  { %2081 = vmatprep.subr.mxu1 %v2346_v42 }
 0x55e   :  { %2074 = vmatmul.mubr.msk.f32.vlgmr.msra.gmra.mxu1 %vm503_vm4, %v1342_v30  ;;  %v2165_v34 = vpop.eup %2164 }
 0x55f   :  { %2082 = vmatpush3.msra.mxu1 %v1507_v32  ;;  %2083 = vmatprep.mubr.msk.f32.mxu1 %vm2349_vm2, %v2346_v42  ;;  %v1667_v35 = vmul.f32 %v2165_v34, %v2541_v6 }
 0x560   :  { %2091 = vmatprep.subr.mxu1 %v2346_v42 }
 0x562   :  { %2084 = vmatmul.mubr.msk.f32.vlgmr.msra.gmra.mxu1 %vm503_vm4, %v1505_v33 }
 0x563   :  { %2092 = vmatpush3.msra.mxu1 %v1507_v32  ;;  %2093 = vmatprep.mubr.msk.f32.mxu1 %vm2349_vm2, %v2346_v42 }
 0x566   :  { %2094 = vmatmul.mubr.msk.f32.vlgmr.msra.gmra.mxu1 %vm503_vm4, %v1667_v35 }
 0x60a   :  { %v587_v36 = vpop.f32.mrf.mxu1 }
 0x60c   :  { %v2025_v39 = vpop.f32.mrf.mxu1 }
 0x60e   :  { %v746_v41 = vpop.f32.mrf.mxu1 }
 0x60f   :  { %1076 = vrot.lane.b32.xlu0 %v746_v41, %s2352_s15 }
 0x610   :  { %v2035_v44 = vpop.f32.mrf.mxu1 }
 0x612   :  { %v912_v42 = vpop.f32.mrf.mxu1 }
 0x613   :  { %1080 = vrot.lane.b32.xlu1 %v912_v42, %s2353_s16 }
 0x614   :  { %v2045_v21 = vpop.f32.mrf.mxu1 }
 0x616   :  { %v1071_v47 = vpop.f32.mrf.mxu1 }
 0x617   :  { %1084 = vrot.lane.b32.xlu1 %v1071_v47, %s2350_s13 }
 0x618   :  { %v2055_v50 = vpop.f32.mrf.mxu1 }
 0x61a   :  { %v1253_v51 = vpop.f32.mrf.mxu1 }
 0x61c   :  { %v2065_v52 = vpop.f32.mrf.mxu1 }
 0x61e   :  { %v1412_v53 = vpop.f32.mrf.mxu1 }
 0x61f   :  { %1742 = vrot.lane.b32.xlu0 %v1412_v53, %s2352_s15 }
 0x620   :  { %v2075_v54 = vpop.f32.mrf.mxu1 }
 0x622   :  { %v1578_v55 = vpop.f32.mrf.mxu1 }
 0x623   :  { %1746 = vrot.lane.b32.xlu0 %v1578_v55, %s2353_s16 }
 0x624   :  { %v2085_v56 = vpop.f32.mrf.mxu1 }
 0x626   :  { %v1737_v57 = vpop.f32.mrf.mxu1 }
 0x627   :  { %1750 = vrot.lane.b32.xlu1 %v1737_v57, %s2350_s13 }
 0x628   :  { %v2095_v58 = vpop.f32.mrf.mxu1 }
 0x681   :  { %v1077_v59 = vpop.permute.xlu0 %1076 }
 0x682   :  { %v1087_v61 = vsel %vm426_vm3, %v587_v36, %v1077_v59 }
 0x685   :  { %v1081_v60 = vpop.permute.xlu1 %1080 }
 0x686   :  { %v1088_v62 = vsel %vm331_vm1, %v1087_v61, %v1081_v60 }
 0x689   :  { %v1085_v63 = vpop.permute.xlu1 %1084 }
 0x68a   :  { %v1090_v0 = vsel %vm1089_vm5, %v1088_v62, %v1085_v63 }
 0x68b   :  { %2112 = vmatprep.mubr.msk.f32.mxu0 %vm132_vm0, %v1090_v0 }
 0x691   :  { %v1743_v1 = vpop.permute.xlu0 %1742 }
 0x692   :  { %v1753_v3 = vsel %vm426_vm3, %v1253_v51, %v1743_v1 }
 0x695   :  { %v1747_v2 = vpop.permute.xlu0 %1746 }
 0x696   :  { %v1754_v4 = vsel %vm331_vm1, %v1753_v3, %v1747_v2 }
 0x699   :  { %v1751_v5 = vpop.permute.xlu1 %1750 }
 0x69a   :  { %v1755_v6 = vsel %vm1089_vm5, %v1754_v4, %v1751_v5 }
 0x69b   :  { %2113 = vmatmul.mubr.msk.f32.vlgmr.msra.gmra.mxu0 %vm132_vm0, %v1755_v6 }
 0x75b   :  { %v2114_v7 = vpop.f32.mrf.mxu0 }
 0x75c   :  { %1846 = vst.msk [vmem:[#allocation14 + $0x8] sm:$0xff] %vm132_vm0, %v2114_v7 }
 0x75d   :  { %v1836_v8 = vpop.f32.mrf.mxu0 }
 0x75e   :  { %1845 = vst.msk [vmem:[#allocation14] sm:$0xff] %vm132_vm0, %v1836_v8 }
 0x75f   :  { %2317 = shalt.err (!%p2314_p11)
}
 0x760   :  { %1858 = dma.vmem_to_hbm [thread:$0]  %s1853_s17, 256, %s2606_s7, [#allocation4], %s2338_s29, %s2338_s29, %s2339_s30  }
 0x761   :  { %2334 = dma.done.wait [#allocation4], 256  }
 0x762   :  { %2335 = vsyncadd [#allocation4], 4294967040 }
 0x763   :  { %1862 = vsyncpa [#allocation3], 1 }
 0x764   :  { %1863 = vsyncpa [#allocation6], 1 }
 0x765   :  { %1864 = vsyncpa [#allocation9], 1 }
 0x766   :  { %1865 = vsyncpa [#allocation12], 1 }
 0x767   :  { %1866 = vsyncpa [#allocation4], 1 }

</bundles_post_ra>
